<compile_context>
chip_gen: v5e
topology: v5e:2x2
jax: 0.10.0
libtpu: 0.0.40
codegen_flags: <defaults>
</compile_context>

<pallas_src>
import jax
import jax.numpy as jnp
from jax.experimental import pallas as pl
from jax.experimental.pallas import tpu as pltpu

LANES = 128
TILE_ROWS = 1024                           # multiple of 8 -> valid f32 sublane tiling
_MIN_KERNEL_ELEMENTS = TILE_ROWS * LANES   # below this, fall back to plain XLA


def _mse_partial_sum_kernel(pred_ref, targ_ref, out_ref):
    """Accumulates sum((pred - targ)^2) over one (TILE_ROWS, 128) tile into the
    resident (8, 128) output block. Grid = (n_split, tiles_per_core); the
    second (last) axis is the reduction axis."""
    i = pl.program_id(1)

    @pl.when(i == 0)
    def _init():
        out_ref[...] = jnp.zeros_like(out_ref)

    d = pred_ref[...].astype(jnp.float32) - targ_ref[...].astype(jnp.float32)
    sq = d * d
    # Fold (TILE_ROWS, 128) -> (8, 128): layout-preserving reshape + a chain of
    # elementwise vreg adds on the VPU (no cross-lane work).
    out_ref[...] += jnp.sum(sq.reshape(TILE_ROWS // 8, 8, LANES), axis=0)


def mse_loss(pred: jax.Array, targ: jax.Array):
    """Pallas equivalent of F.mse_loss(pred, targ, reduction='mean')."""
    assert pred.shape == targ.shape, "pred and targ must have identical shapes"
    n = pred.size

    if n < _MIN_KERNEL_ELEMENTS:
        # Tiny input: kernel-launch overhead dominates; let XLA fuse it.
        diff = pred.astype(jnp.float32) - targ.astype(jnp.float32)
        loss = jnp.mean(jnp.square(diff))
        return {"loss": loss, "L2": loss}

    pflat = pred.reshape(-1)
    tflat = targ.reshape(-1)

    rows_avail = n // LANES
    tiles_total = rows_avail // TILE_ROWS          # >= 1 given the threshold
    n_split = 2 if tiles_total >= 2 else 1         # v7x: one half per TensorCore
    tiles_per_core = tiles_total // n_split
    rows_kernel = n_split * tiles_per_core * TILE_ROWS
    n_kernel = rows_kernel * LANES                 # elements covered by the kernel

    if n % LANES == 0:
        # Free reshape of the contiguous buffer; the kernel only reads the
        # first rows_kernel rows (uncovered blocks are never DMA'd).
        p2 = pflat.reshape(n // LANES, LANES)
        t2 = tflat.reshape(n // LANES, LANES)
    else:
        # Rare (n not 128-aligned): one prefix-slice copy is unavoidable here.
        # TODO(synk): a manual-DMA 1-D kernel could avoid this copy if it matters.
        p2 = pflat[:n_kernel].reshape(rows_kernel, LANES)
        t2 = tflat[:n_kernel].reshape(rows_kernel, LANES)

    in_map = lambda c, i: (c * tiles_per_core + i, 0)

    partials = pl.pallas_call(
        _mse_partial_sum_kernel,
        out_shape=jax.ShapeDtypeStruct((n_split * 8, LANES), jnp.float32),
        grid_spec=pltpu.PrefetchScalarGridSpec(
            num_scalar_prefetch=0,
            grid=(n_split, tiles_per_core),
            in_specs=[
                pl.BlockSpec((TILE_ROWS, LANES), in_map),
                pl.BlockSpec((TILE_ROWS, LANES), in_map),
            ],
            out_specs=pl.BlockSpec((8, LANES), lambda c, i: (c, 0)),
        ),
        compiler_params=pltpu.CompilerParams(
            dimension_semantics=("parallel", "arbitrary"),
        ),
    )(p2, t2)

    total_ss = jnp.sum(partials)

    # Suffix not covered by the kernel grid (leftover rows + sub-128 remainder):
    # at most ~n_split*TILE_ROWS*LANES elements, handled by a fused XLA reduce.
    if n_kernel < n:
        tail_p = pflat[n_kernel:].astype(jnp.float32)
        tail_t = tflat[n_kernel:].astype(jnp.float32)
        total_ss = total_ss + jnp.sum(jnp.square(tail_p - tail_t))

    loss = total_ss / n
    return {"loss": loss, "L2": loss}


if __name__ == "__main__":
    key = jax.random.PRNGKey(0)
    # [batch_size x horizon x states] shapes exercising all three code paths.
    cases = [
        (2, 8, 32),      # tiny -> XLA fallback path
        (8, 520, 128),   # 128-aligned -> Pallas: 2-way core split, 2 tiles/core, row tail
        (3, 700, 130),   # not 128-aligned -> Pallas + lane-remainder tail path
    ]
    for shape in cases:
        key, kp, kt = jax.random.split(key, 3)
        pred = jax.random.normal(kp, shape, dtype=jnp.float32)
        targ = jax.random.normal(kt, shape, dtype=jnp.float32)

        out = mse_loss(pred, targ)
        jax.block_until_ready(out["loss"])

        ref = jnp.mean(jnp.square(pred - targ))
        assert jnp.allclose(out["loss"], ref, rtol=1e-4, atol=1e-5), (shape, out["loss"], ref)
        assert jnp.allclose(out["L2"], ref, rtol=1e-4, atol=1e-5), (shape, out["L2"], ref)

    print("KERNEL_OK")
</pallas_src>

<mosaic_0001>
module attributes {stable_mosaic.version = 11 : i64} {
  func.func @_mse_partial_sum_kernel(%arg0: i32, %arg1: i32, %arg2: memref<1024x128xf32, #tpu.memory_space<vmem>>, %arg3: memref<1024x128xf32, #tpu.memory_space<vmem>>, %arg4: memref<8x128xf32, #tpu.memory_space<vmem>>) attributes {dimension_semantics = [#tpu.dimension_semantics<parallel>, #tpu.dimension_semantics<arbitrary>], iteration_bounds = array<i64: 2, 2>, scalar_prefetch = 0 : i64, scratch_operands = 0 : i64, tpu.core_type = #tpu.core_type<tc>, window_params = [{transform_indices = @transform_0, window_bounds = array<i64: 1024, 128>}, {transform_indices = @transform_1, window_bounds = array<i64: 1024, 128>}, {transform_indices = @transform_2, window_bounds = array<i64: 8, 128>}]} {
    %c0_i32 = arith.constant 0 : i32
    %0 = arith.cmpi eq, %arg1, %c0_i32 : i32
    %1 = arith.extui %0 : i1 to i32
    %c0_i32_0 = arith.constant 0 : i32
    %2 = arith.cmpi ne, %1, %c0_i32_0 : i32
    scf.if %2 {
      %cst_8 = arith.constant 0.000000e+00 : f32
      %12 = vector.broadcast %cst_8 : f32 to vector<8x128xf32>
      %c0_9 = arith.constant 0 : index
      %c0_10 = arith.constant 0 : index
      %13 = vector.load %arg4[%c0_9, %c0_10] : memref<8x128xf32, #tpu.memory_space<vmem>>, vector<8x128xf32>
      tpu.vector_store %arg4[%c0_9, %c0_10], %12 {strides = array<i32>} : memref<8x128xf32, #tpu.memory_space<vmem>>, vector<8x128xf32>,
    } else {
    }
    %c0 = arith.constant 0 : index
    %c0_1 = arith.constant 0 : index
    %3 = vector.load %arg2[%c0, %c0_1] : memref<1024x128xf32, #tpu.memory_space<vmem>>, vector<1024x128xf32>
    %c0_2 = arith.constant 0 : index
    %c0_3 = arith.constant 0 : index
    %4 = vector.load %arg3[%c0_2, %c0_3] : memref<1024x128xf32, #tpu.memory_space<vmem>>, vector<1024x128xf32>
    %5 = arith.subf %3, %4 : vector<1024x128xf32>
    %6 = arith.mulf %5, %5 : vector<1024x128xf32>
    %c0_4 = arith.constant 0 : index
    %c0_5 = arith.constant 0 : index
    %7 = vector.load %arg4[%c0_4, %c0_5] : memref<8x128xf32, #tpu.memory_space<vmem>>, vector<8x128xf32>
    %8 = vector.shape_cast %6 : vector<1024x128xf32> to vector<128x8x128xf32>
    %cst = arith.constant dense<0.000000e+00> : vector<8x128xf32>
    %9 = vector.multi_reduction <add>, %8, %cst [0] : vector<128x8x128xf32> to vector<8x128xf32>
    %10 = arith.addf %7, %9 : vector<8x128xf32>
    %c0_6 = arith.constant 0 : index
    %c0_7 = arith.constant 0 : index
    %11 = vector.load %arg4[%c0_6, %c0_7] : memref<8x128xf32, #tpu.memory_space<vmem>>, vector<8x128xf32>
    tpu.vector_store %arg4[%c0_6, %c0_7], %10 {strides = array<i32>} : memref<8x128xf32, #tpu.memory_space<vmem>>, vector<8x128xf32>,
    return
  }
  func.func @transform_0(%arg0: i32, %arg1: i32) -> (i32, i32) {
    %c2_i32 = arith.constant 2 : i32
    %0 = arith.muli %arg0, %c2_i32 : i32
    %1 = arith.addi %0, %arg1 : i32
    %c0_i32 = arith.constant 0 : i32
    %c0_i32_0 = arith.constant 0 : i32
    return %1, %c0_i32 : i32, i32
  }
  func.func @transform_1(%arg0: i32, %arg1: i32) -> (i32, i32) {
    %c2_i32 = arith.constant 2 : i32
    %0 = arith.muli %arg0, %c2_i32 : i32
    %1 = arith.addi %0, %arg1 : i32
    %c0_i32 = arith.constant 0 : i32
    %c0_i32_0 = arith.constant 0 : i32
    return %1, %c0_i32 : i32, i32
  }
  func.func @transform_2(%arg0: i32, %arg1: i32) -> (i32, i32) {
    %c0_i32 = arith.constant 0 : i32
    %c0_i32_0 = arith.constant 0 : i32
    return %arg0, %c0_i32 : i32, i32
  }
}

</mosaic_0001>

<bundles_post_ra>
// kernel: tpu_custom_call.1
= control target key start
LH: loop header
LB: loop body
LE: loop exit
PB: predicated region body
PF: predicated region fallthrough
CT: control target
= control target key end

     0   :  { %7 = vsyncpa [#allocation3], 0  ;;  %s1864_s0 = inlined_call_operand.hbm [shape: f32[4160,128], index: 0, kind: input, shape index: {}]   ;;  %s1865_s1 = inlined_call_operand.hbm [shape: f32[4160,128], index: 1, kind: input, shape index: {}]   ;;  %s1866_s2 = inlined_call_operand.hbm [shape: f32[16,128], index: 2, kind: output, shape index: {}]  }
   0x1   :  { %9 = vsyncpa [#allocation3 + $0x1], 0 }
   0x2   :  { %10 = vsyncpa [#allocation6], 0 }
   0x3   :  { %12 = vsyncpa [#allocation6 + $0x1], 0 }
   0x4   :  { %13 = vsyncpa [#allocation4], 0 }
   0x5   :  { %15 = vsyncpa [#allocation4 + $0x1], 0  ;;  %s1398_s9 = smov 0   ;;  %s1400_s10 = smov 0  }
   0x6   :  { %s1402_s11 = smov 0   ;;  %s1404_s12 = smov 0  }
   0x7   :  { %s1406_s13 = smov 0   ;;  %s1408_s14 = smov 0  }
   0x8   :  { %s1410_s15 = smov 0   ;;  %s1412_s16 = smov 0  }
   0x9   :  { %s1414_s17 = smov 0   ;;  %s1416_s18 = smov 0  }
   0xa   :  { %s1418_s19 = smov 0  }
   0xb LB: > { %1871 = sst [smem:[#allocation11_spill]] %s1366_s17  ;;  %s1029_s20 = sadd.s32 4294967295, %s1374_s19   ;;  %s1374_s19 = sphi %s1418_s19, %s21_s19   ;;  %s1370_s18 = sphi %s1416_s18, %s1886_s18   ;;  %s1366_s17 = sphi %s1414_s17, %s1885_s17   ;;  %s1362_s16 = sphi %s1412_s16, %s1884_s16   ;;  %s1358_s15 = sphi %s1410_s15, %s1883_s15   ;;  %s1354_s14 = sphi %s1408_s14, %s1892_s14   ;;  %s1350_s13 = sphi %s1406_s13, %s1891_s13   ;;  %s1346_s12 = sphi %s1404_s12, %s1890_s12   ;;  %s1342_s11 = sphi %s1402_s11, %s1889_s11   ;;  %s1338_s10 = sphi %s1400_s10, %s1888_s10   ;;  %s1334_s9 = sphi %s1398_s9, %s1887_s9  }
   0xc   : > { %1872 = sst [smem:[#allocation12_spill]] %s1370_s18  ;;  %s1030_s21 = sadd.s32 4294967294, %s1374_s19  }
   0xd   : > { %s30_s22 = sadd.s32 1, %s1366_s17  ;;  %s33_s23 = sadd.s32 1, %s1370_s18 }
   0xe   : > { %p31_p0 = scmp.ge.s32.totalorder %s30_s22, 2  ;;  %s1031_s24 = sshll.u32 %s1370_s18, 1 }
   0xf   : > { %s1457_s25 = sadd.s32 %s1366_s17, %s1031_s24  ;;  %s44_s26 = sadd.s32 1, %s1354_s14 }
  0x10   : > { %s1894_s22 = smov (%p31_p0, %s30_s22), 0  ;;  %s1896_s23 = smov (!%p31_p0, %s33_s23), %s1370_s18 }
  0x11   : > { %1873 = sst [smem:[#allocation13_spill]] %s1894_s22  ;;  %p51_p1 = scmp.ne.s32.totalorder %s1354_s14, %s1350_s13 }
  0x12   : > { %p52_p2 = scmp.eq.s32.totalorder %s1374_s19, 0  ;;  %p35_p3 = scmp.ge.s32.totalorder %s1896_s23, 2 }
  0x13   : > { %p57_p4 = scmp.ne.s32.totalorder %s1350_s13, %s1346_s12  ;;  %p58_p6 = scmp.eq.s32.totalorder %s1029_s20, 0 }
  0x14   : > { %p1467_p5 = por %p52_p2, %p51_p1  ;;  %s1898_s23 = smov (%p35_p3, %s1896_s23), 0 }
  0x15   : > { %1875 = sst [smem:[#allocation14_spill]] %s1898_s23  ;;  %p1473_p7 = por %p58_p6, %p57_p4 }
  0x16   : > { %s100_s29 = sadd.s32 1, %s1342_s11  ;;  %s1032_s30 = sshll.u32 %s1898_s23, 1 }
  0x17   : > { %s97_s3 = ssub.s32 %s1370_s18, %s1898_s23  ;;  %s40_s4 = sadd.s32 %s1032_s30, %s1894_s22 }
  0x18   : > { %p98_p8 = scmp.eq.s32.totalorder %s97_s3, 0  ;;  %s41_s5 = ssub.s32 %s1457_s25, %s40_s4 }
  0x19   : > { %p110_p9 = scmp.ne.s32.totalorder %s1342_s11, %s1338_s10  ;;  %p42_p10 = scmp.eq.s32.totalorder %s41_s5, 0 }
  0x1a   : > { %p111_p11 = scmp.eq.s32.totalorder %s1029_s20, 3  ;;  %p116_p13 = scmp.ne.s32.totalorder %s1338_s10, %s1334_s9 }
  0x1b   : > { %s1486_s6 = scalar_select %p98_p8, %s1342_s11, %s100_s29  }
  0x1c   : > { %s1489_s7 = scalar_select %p42_p10, %s1354_s14, %s44_s26  }
  0x1d   : > { %1877 = sst [smem:[#allocation15_spill]] %s1486_s6  ;;  %p1491_p12 = por %p111_p11, %p110_p9 }
  0x1e   : > { %1878 = sst [smem:[#allocation16_spill]] %s1489_s7  ;;  %p117_p0 = scmp.eq.s32.totalorder %s1030_s21, 3 }
  0x1f   : > { %p1036_p2 = scmp.ge.s32.totalorder %s1374_s19, 4 }
  0x20   : > { %p1499_p1 = por %p117_p0, %p116_p13 }
  0x21   : > { %133 = sbr.rel (%p1036_p2) target bundleno = 80 (0x50), region = 16 }
  0x26   : > { %136 = sbr.rel (!%p1467_p5) target bundleno = 59 (0x3b), region = 20  ;;  %s137_s20 = sand.u32 (%p1467_p5), 1, %s1354_s14  }
  0x27   : > { %s1037_s24 = sshll.u32 (%p1467_p5), %s137_s20, 10  ;;  %s1507_s26 = scalar_lea.sflag (%p1467_p5), [#allocation3], %s137_s20 }
  0x28   : > { %s141_s29 = scalar_lea.vmem (%p1467_p5), [#allocation2], %s1037_s24  ;;  %s1062_s30 = sshll.u32 (%p1467_p5), %s1457_s25, 10 }
  0x29   : > { %s154_s4 = scalar_lea.hbm (%p1467_p5), %s1864_s0, %s1062_s30  ;;  %s158_s5 = sshll.u32 (%p1467_p5), %s141_s29, 4  ;;  %s159_s5 = int_to_ptr.vmem [resolvable:$true] %s158_s5 }
  0x2a   : > { %s156_s23 = sshll.u32 (%p1467_p5), %s154_s4, 4  ;;  %s1177_s6 = scalar_lea.hbm (%p1467_p5), %s1864_s0, 4160  ;;  %s157_s23 = int_to_ptr.hbm [resolvable:$true] %s156_s23 }
  0x2b   : > { %s1166_s22 = sshra.s32 %s157_s23, 4  ;;  %s1167_s22 = int_to_ptr.hbm [resolvable:$true] %s1166_s22 }
  0x2c   : > { %s1173_s18 = scalar_lea.hbm %s1167_s22, 1024 }
  0x2d   : > { %p1174_p3 = scmp.ne.s32.totalorder %s1167_s22, %s1173_s18  ;;  %p1179_p4 = scmp.lt.s32.totalorder %s1177_s6, %s1173_s18 }
  0x2f   : > { %p1181_p6 = pnand %p1179_p4, %p1174_p3 }
  0x31   : > { %1184 = shalt.err (!%p1181_p6)
}
  0x32   : > { %s1185_s20 = sshra.s32 %s159_s5, 4  ;;  %s1376_s30 = smov [#allocation2]   ;;  %s1186_s20 = int_to_ptr.vmem [resolvable:$true] %s1185_s20 }
  0x33   : > { %s1192_s24 = scalar_lea.vmem %s1186_s20, 1024  ;;  %s1196_s29 = scalar_lea.vmem %s1376_s30, 2048 }
  0x34   : > { %p1193_p8 = scmp.ne.s32.totalorder %s1186_s20, %s1192_s24  ;;  %p1198_p9 = scmp.lt.s32.totalorder %s1196_s29, %s1192_s24 }
  0x36   : > { %p1200_p10 = pnand %p1198_p9, %p1193_p8 }
  0x38   : > { %1203 = shalt.err (!%p1200_p10)
}
  0x39   : > { %s1377_s3 = smov 128   ;;  %s1378_s21 = smov 8  }
  0x3a   : > { %164 = dma.hbm_to_vmem [thread:$0]  %s157_s23, 16384, %s159_s5, %s1507_s26, %s1377_s3, %s1377_s3, %s1378_s21  }
  0x3b PF: > { %167 = sbr.rel (!%p1467_p5) target bundleno = 80 (0x50), region = 24  ;;  %s168_s17 = sand.u32 (%p1467_p5), 1, %s1354_s14  }
  0x3c   : > { %s1045_s18 = sshll.u32 (%p1467_p5), %s168_s17, 10  ;;  %s1520_s22 = scalar_lea.sflag (%p1467_p5), [#allocation6], %s168_s17 }
  0x3d   : > { %s172_s6 = scalar_lea.vmem (%p1467_p5), [#allocation5], %s1045_s18  ;;  %s1063_s7 = sshll.u32 (%p1467_p5), %s1457_s25, 10 }
  0x3e   : > { %s185_s24 = scalar_lea.hbm (%p1467_p5), %s1865_s1, %s1063_s7  ;;  %s189_s30 = sshll.u32 (%p1467_p5), %s172_s6, 4  ;;  %s190_s30 = int_to_ptr.vmem [resolvable:$true] %s189_s30 }
  0x3f   : > { %s187_s29 = sshll.u32 (%p1467_p5), %s185_s24, 4  ;;  %s1216_s3 = scalar_lea.hbm (%p1467_p5), %s1865_s1, 4160  ;;  %s188_s29 = int_to_ptr.hbm [resolvable:$true] %s187_s29 }
  0x40   : > { %s1205_s23 = sshra.s32 %s188_s29, 4  ;;  %s1206_s23 = int_to_ptr.hbm [resolvable:$true] %s1205_s23 }
  0x41   : > { %s1212_s27 = scalar_lea.hbm %s1206_s23, 1024 }
  0x42   : > { %p1213_p5 = scmp.ne.s32.totalorder %s1206_s23, %s1212_s27  ;;  %p1218_p11 = scmp.lt.s32.totalorder %s1216_s3, %s1212_s27 }
  0x44   : > { %p1220_p13 = pnand %p1218_p11, %p1213_p5 }
  0x46   : > { %1223 = shalt.err (!%p1220_p13)
}
  0x47   : > { %s1224_s25 = sshra.s32 %s190_s30, 4  ;;  %s1379_s17 = smov [#allocation5]   ;;  %s1225_s25 = int_to_ptr.vmem [resolvable:$true] %s1224_s25 }
  0x48   : > { %s1231_s21 = scalar_lea.vmem %s1225_s25, 1024  ;;  %s1235_s18 = scalar_lea.vmem %s1379_s17, 2048 }
  0x49   : > { %p1232_p0 = scmp.ne.s32.totalorder %s1225_s25, %s1231_s21  ;;  %p1237_p2 = scmp.lt.s32.totalorder %s1235_s18, %s1231_s21 }
  0x4b   : > { %p1239_p3 = pnand %p1237_p2, %p1232_p0 }
  0x4d   : > { %1242 = shalt.err (!%p1239_p3)
}
  0x4e   : > { %s1380_s6 = smov 128   ;;  %s1381_s7 = smov 8  }
  0x4f   : > { %195 = dma.hbm_to_vmem [thread:$0]  %s188_s29, 16384, %s190_s30, %s1520_s22, %s1380_s6, %s1380_s6, %s1381_s7  }
  0x50 PF: > { %p1053_p4 = scmp.ge.s32.totalorder %s1374_s19, 1  ;;  %p197_p6 = scmp.lt.s32.totalorder %s1374_s19, 5 }
  0x52   : > { %p198_p8 = pnand %p1053_p4, %p197_p6 }
  0x53   : > { %s203_s4 = sand.u32 (!%p198_p8), 1, %s1350_s13  }
  0x54   : > { %201 = sbr.rel (%p198_p8) target bundleno = 366 (0x16e), region = 28  ;;  %s1054_s20 = sshll.u32 (!%p198_p8), %s203_s4, 10 }
  0x55   : > { %s204_s24 = scalar_lea.sflag (!%p198_p8), [#allocation3], %s203_s4  ;;  %s1533_s23 = scalar_lea.vmem (!%p198_p8), [#allocation2], %s1054_s20 }
  0x59   : > { %1317 = dma.done.wait (%p1473_p7), %s204_s24, 16384  }
  0x5a   : > { %1319 = vsyncadd (%p1473_p7), %s204_s24, 4294950912  ;;  %s214_s22 = scalar_lea.sflag [#allocation6], %s203_s4  ;;  %s1539_s30 = scalar_lea.vmem [#allocation5], %s1054_s20 }
  0x5b   : > { %1321 = dma.done.wait (%p1473_p7), %s214_s22, 16384  }
  0x5c   : > { %1323 = vsyncadd (%p1473_p7), %s214_s22, 4294950912  ;;  %s241_s29 = sand.u32 1, %s1338_s10   ;;  %p1057_p9 = scmp.ne.s32.totalorder %s1358_s15, 0 }
  0x5d   : > { %s1056_s27 = sshll.u32 %s241_s29, 3 }
  0x5e   : > { %s1548_s26 = scalar_lea.vmem [#allocation7], %s1056_s27  ;;  %261 = sbr.rel (%p1057_p9) target bundleno = 101 (0x65), region = 40 }
  0x63   : > { %v1382_v0 = vmov 0.0  }
  0x64   : > { %262 = vst [vmem:[%s1548_s26] sm:$0xff] %v1382_v0 }
  0x65 PF: > { %v263_v1 = vld [vmem:[%s1533_s23] sm:$0xff]  ;;  %v264_v2 = vld [vmem:[%s1533_s23 + $0x8] sm:$0xff]  ;;  %v265_v5 = vld [vmem:[%s1533_s23 + $0x10] sm:$0xff]  ;;  %s1059_s15 = sshll.u32 %s1362_s16, 3  ;;  %s918_s25 = sshll.u32 %s1548_s26, 4  ;;  %s919_s25 = int_to_ptr.vmem [resolvable:$true] %s918_s25 }
  0x66   : > { %v391_v3 = vld [vmem:[%s1539_s30] sm:$0xff]  ;;  %v392_v4 = vld [vmem:[%s1539_s30 + $0x8] sm:$0xff]  ;;  %v393_v6 = vld [vmem:[%s1539_s30 + $0x10] sm:$0xff]  ;;  %s916_s3 = scalar_lea.hbm %s1866_s2, %s1059_s15  ;;  %s906_s16 = scalar_lea.sflag [#allocation4], %s241_s29 }
  0x67   : > { %v519_v7 = vsub.f32 %v263_v1, %v391_v3  ;;  %v520_v8 = vsub.f32 %v264_v2, %v392_v4  ;;  %v266_v9 = vld [vmem:[%s1533_s23 + $0x18] sm:$0xff]  ;;  %v521_v11 = vsub.f32 %v265_v5, %v393_v6  ;;  %v267_v12 = vld [vmem:[%s1533_s23 + $0x20] sm:$0xff]  ;;  %v268_v17 = vld [vmem:[%s1533_s23 + $0x28] sm:$0xff]  ;;  %s920_s21 = sshll.u32 %s916_s3, 4  ;;  %s1264_s4 = scalar_lea.hbm %s1866_s2, 16  ;;  %s921_s21 = int_to_ptr.hbm [resolvable:$true] %s920_s21 }
  0x68   : > { %v394_v10 = vld [vmem:[%s1539_s30 + $0x18] sm:$0xff]  ;;  %v395_v13 = vld [vmem:[%s1539_s30 + $0x20] sm:$0xff]  ;;  %v396_v18 = vld [vmem:[%s1539_s30 + $0x28] sm:$0xff]  ;;  %s1258_s17 = sshra.s32 %s921_s21, 4  ;;  %s1259_s17 = int_to_ptr.hbm [resolvable:$true] %s1258_s17 }
  0x69   : > { %v522_v14 = vsub.f32 %v266_v9, %v394_v10  ;;  %v647_v15 = vmul.f32 %v519_v7, %v519_v7  ;;  %v648_v16 = vmul.f32 %v520_v8, %v520_v8  ;;  %v523_v19 = vsub.f32 %v267_v12, %v395_v13  ;;  %v269_v21 = vld [vmem:[%s1533_s23 + $0x30] sm:$0xff]  ;;  %v270_v26 = vld [vmem:[%s1533_s23 + $0x38] sm:$0xff]  ;;  %v271_v31 = vld [vmem:[%s1533_s23 + $0x40] sm:$0xff]  ;;  %s1260_s18 = scalar_lea.hbm %s1259_s17, 8  ;;  %p1265_p11 = scmp.lt.s32.totalorder %s1259_s17, %s1866_s2 }
  0x6a   : > { %v649_v20 = vmul.f32 %v521_v11, %v521_v11  ;;  %v397_v22 = vld [vmem:[%s1539_s30 + $0x30] sm:$0xff]  ;;  %v524_v23 = vsub.f32 %v268_v17, %v396_v18  ;;  %v398_v27 = vld [vmem:[%s1539_s30 + $0x38] sm:$0xff]  ;;  %v399_v32 = vld [vmem:[%s1539_s30 + $0x40] sm:$0xff]  ;;  %p1261_p7 = scmp.ne.s32.totalorder %s1259_s17, %s1260_s18  ;;  %p1266_p13 = scmp.lt.s32.totalorder %s1264_s4, %s1260_s18 }
  0x6b   : > { %v650_v24 = vmul.f32 %v522_v14, %v522_v14  ;;  %v776_v25 = vadd.f32 %v648_v16, %v647_v15  ;;  %v525_v28 = vsub.f32 %v269_v21, %v397_v22  ;;  %v651_v29 = vmul.f32 %v523_v19, %v523_v19  ;;  %v272_v36 = vld [vmem:[%s1533_s23 + $0x48] sm:$0xff]  ;;  %v273_v41 = vld [vmem:[%s1533_s23 + $0x50] sm:$0xff]  ;;  %v274_v46 = vld [vmem:[%s1533_s23 + $0x58] sm:$0xff] }
  0x6c   : > { %v526_v33 = vsub.f32 %v270_v26, %v398_v27  ;;  %v652_v34 = vmul.f32 %v524_v23, %v524_v23  ;;  %v400_v37 = vld [vmem:[%s1539_s30 + $0x48] sm:$0xff]  ;;  %v527_v38 = vsub.f32 %v271_v31, %v399_v32  ;;  %v401_v42 = vld [vmem:[%s1539_s30 + $0x50] sm:$0xff]  ;;  %v402_v47 = vld [vmem:[%s1539_s30 + $0x58] sm:$0xff]  ;;  %p1262_p10 = pnand %p1261_p7, %p1491_p12  ;;  %p1267_p0 = por %p1266_p13, %p1265_p11 }
  0x6d   : > { %v777_v30 = vadd.f32 %v776_v25, %v649_v20  ;;  %v653_v39 = vmul.f32 %v525_v28, %v525_v28  ;;  %v528_v43 = vsub.f32 %v272_v36, %v400_v37  ;;  %v529_v48 = vsub.f32 %v273_v41, %v401_v42  ;;  %v275_v51 = vld [vmem:[%s1533_s23 + $0x60] sm:$0xff]  ;;  %v276_v56 = vld [vmem:[%s1533_s23 + $0x68] sm:$0xff]  ;;  %v277_v61 = vld [vmem:[%s1533_s23 + $0x70] sm:$0xff] }
  0x6e   : > { %v654_v44 = vmul.f32 %v526_v33, %v526_v33  ;;  %v655_v49 = vmul.f32 %v527_v38, %v527_v38  ;;  %v403_v52 = vld [vmem:[%s1539_s30 + $0x60] sm:$0xff]  ;;  %v530_v53 = vsub.f32 %v274_v46, %v402_v47  ;;  %v404_v57 = vld [vmem:[%s1539_s30 + $0x68] sm:$0xff]  ;;  %v405_v62 = vld [vmem:[%s1539_s30 + $0x70] sm:$0xff]  ;;  %p1263_p5 = pneg %p1262_p10 }
  0x6f   : > { %v778_v35 = vadd.f32 %v777_v30, %v650_v24  ;;  %v656_v54 = vmul.f32 %v528_v43, %v528_v43  ;;  %v531_v58 = vsub.f32 %v275_v51, %v403_v52  ;;  %v657_v59 = vmul.f32 %v529_v48, %v529_v48  ;;  %v278_v2 = vld [vmem:[%s1533_s23 + $0x78] sm:$0xff]  ;;  %v279_v7 = vld [vmem:[%s1533_s23 + $0x80] sm:$0xff]  ;;  %v280_v12 = vld [vmem:[%s1533_s23 + $0x88] sm:$0xff] }
  0x70   : > { %v532_v63 = vsub.f32 %v276_v56, %v404_v57  ;;  %v658_v0 = vmul.f32 %v530_v53, %v530_v53  ;;  %v406_v3 = vld [vmem:[%s1539_s30 + $0x78] sm:$0xff]  ;;  %v533_v4 = vsub.f32 %v277_v61, %v405_v62  ;;  %v407_v8 = vld [vmem:[%s1539_s30 + $0x80] sm:$0xff]  ;;  %v408_v13 = vld [vmem:[%s1539_s30 + $0x88] sm:$0xff]  ;;  %p1268_p2 = pnand %p1267_p0, %p1263_p5 }
  0x71   : > { %v779_v40 = vadd.f32 %v778_v35, %v651_v29  ;;  %v659_v5 = vmul.f32 %v531_v58, %v531_v58  ;;  %v534_v9 = vsub.f32 %v278_v2, %v406_v3  ;;  %v535_v14 = vsub.f32 %v279_v7, %v407_v8  ;;  %v281_v17 = vld [vmem:[%s1533_s23 + $0x90] sm:$0xff]  ;;  %v282_v22 = vld [vmem:[%s1533_s23 + $0x98] sm:$0xff]  ;;  %v283_v27 = vld [vmem:[%s1533_s23 + $0xa0] sm:$0xff] }
  0x72   : > { %v660_v10 = vmul.f32 %v532_v63, %v532_v63  ;;  %v661_v15 = vmul.f32 %v533_v4, %v533_v4  ;;  %v409_v18 = vld [vmem:[%s1539_s30 + $0x90] sm:$0xff]  ;;  %v536_v19 = vsub.f32 %v280_v12, %v408_v13  ;;  %v410_v23 = vld [vmem:[%s1539_s30 + $0x98] sm:$0xff]  ;;  %v411_v28 = vld [vmem:[%s1539_s30 + $0xa0] sm:$0xff] }
  0x73   : > { %v780_v45 = vadd.f32 %v779_v40, %v652_v34  ;;  %v662_v20 = vmul.f32 %v534_v9, %v534_v9  ;;  %v537_v24 = vsub.f32 %v281_v17, %v409_v18  ;;  %v663_v25 = vmul.f32 %v535_v14, %v535_v14  ;;  %v284_v32 = vld [vmem:[%s1533_s23 + $0xa8] sm:$0xff]  ;;  %v285_v37 = vld [vmem:[%s1533_s23 + $0xb0] sm:$0xff]  ;;  %v286_v42 = vld [vmem:[%s1533_s23 + $0xb8] sm:$0xff] }
  0x74   : > { %v538_v29 = vsub.f32 %v282_v22, %v410_v23  ;;  %v664_v30 = vmul.f32 %v536_v19, %v536_v19  ;;  %v412_v33 = vld [vmem:[%s1539_s30 + $0xa8] sm:$0xff]  ;;  %v539_v34 = vsub.f32 %v283_v27, %v411_v28  ;;  %v413_v38 = vld [vmem:[%s1539_s30 + $0xb0] sm:$0xff]  ;;  %v414_v43 = vld [vmem:[%s1539_s30 + $0xb8] sm:$0xff] }
  0x75   : > { %v781_v50 = vadd.f32 %v780_v45, %v653_v39  ;;  %v665_v35 = vmul.f32 %v537_v24, %v537_v24  ;;  %v540_v39 = vsub.f32 %v284_v32, %v412_v33  ;;  %v287_v47 = vld [vmem:[%s1533_s23 + $0xc0] sm:$0xff]  ;;  %v288_v52 = vld [vmem:[%s1533_s23 + $0xc8] sm:$0xff]  ;;  %v289_v57 = vld [vmem:[%s1533_s23 + $0xd0] sm:$0xff] }
  0x76   : > { %v666_v40 = vmul.f32 %v538_v29, %v538_v29  ;;  %v667_v45 = vmul.f32 %v539_v34, %v539_v34  ;;  %v415_v48 = vld [vmem:[%s1539_s30 + $0xc0] sm:$0xff]  ;;  %v416_v53 = vld [vmem:[%s1539_s30 + $0xc8] sm:$0xff]  ;;  %v417_v58 = vld [vmem:[%s1539_s30 + $0xd0] sm:$0xff] }
  0x77   : > { %v782_v55 = vadd.f32 %v781_v50, %v654_v44  ;;  %v541_v44 = vsub.f32 %v285_v37, %v413_v38  ;;  %v668_v50 = vmul.f32 %v540_v39, %v540_v39  ;;  %v290_v62 = vld [vmem:[%s1533_s23 + $0xd8] sm:$0xff]  ;;  %v291_v3 = vld [vmem:[%s1533_s23 + $0xe0] sm:$0xff]  ;;  %v292_v8 = vld [vmem:[%s1533_s23 + $0xe8] sm:$0xff] }
  0x78   : > { %v418_v63 = vld [vmem:[%s1539_s30 + $0xd8] sm:$0xff]  ;;  %v419_v4 = vld [vmem:[%s1539_s30 + $0xe0] sm:$0xff]  ;;  %v420_v9 = vld [vmem:[%s1539_s30 + $0xe8] sm:$0xff] }
  0x79   : > { %v783_v60 = vadd.f32 %v782_v55, %v655_v49  ;;  %v542_v49 = vsub.f32 %v286_v42, %v414_v43  ;;  %v669_v55 = vmul.f32 %v541_v44, %v541_v44  ;;  %v293_v13 = vld [vmem:[%s1533_s23 + $0xf0] sm:$0xff]  ;;  %v294_v18 = vld [vmem:[%s1533_s23 + $0xf8] sm:$0xff]  ;;  %v295_v23 = vld [vmem:[%s1533_s23 + $0x100] sm:$0xff] }
  0x7a   : > { %v421_v14 = vld [vmem:[%s1539_s30 + $0xf0] sm:$0xff]  ;;  %v422_v19 = vld [vmem:[%s1539_s30 + $0xf8] sm:$0xff]  ;;  %v423_v24 = vld [vmem:[%s1539_s30 + $0x100] sm:$0xff] }
  0x7b   : > { %v784_v1 = vadd.f32 %v783_v60, %v656_v54  ;;  %v543_v54 = vsub.f32 %v287_v47, %v415_v48  ;;  %v670_v60 = vmul.f32 %v542_v49, %v542_v49  ;;  %v296_v28 = vld [vmem:[%s1533_s23 + $0x108] sm:$0xff]  ;;  %v297_v33 = vld [vmem:[%s1533_s23 + $0x110] sm:$0xff]  ;;  %v298_v38 = vld [vmem:[%s1533_s23 + $0x118] sm:$0xff] }
  0x7c   : > { %v424_v29 = vld [vmem:[%s1539_s30 + $0x108] sm:$0xff]  ;;  %v425_v34 = vld [vmem:[%s1539_s30 + $0x110] sm:$0xff]  ;;  %v426_v39 = vld [vmem:[%s1539_s30 + $0x118] sm:$0xff] }
  0x7d   : > { %v785_v6 = vadd.f32 %v784_v1, %v657_v59  ;;  %v544_v59 = vsub.f32 %v288_v52, %v416_v53  ;;  %v671_v1 = vmul.f32 %v543_v54, %v543_v54  ;;  %v299_v43 = vld [vmem:[%s1533_s23 + $0x120] sm:$0xff]  ;;  %v300_v48 = vld [vmem:[%s1533_s23 + $0x128] sm:$0xff]  ;;  %v301_v53 = vld [vmem:[%s1533_s23 + $0x130] sm:$0xff] }
  0x7e   : > { %v427_v44 = vld [vmem:[%s1539_s30 + $0x120] sm:$0xff]  ;;  %v428_v49 = vld [vmem:[%s1539_s30 + $0x128] sm:$0xff]  ;;  %v429_v54 = vld [vmem:[%s1539_s30 + $0x130] sm:$0xff] }
  0x7f   : > { %v786_v11 = vadd.f32 %v785_v6, %v658_v0  ;;  %v545_v0 = vsub.f32 %v289_v57, %v417_v58  ;;  %v672_v6 = vmul.f32 %v544_v59, %v544_v59  ;;  %v302_v58 = vld [vmem:[%s1533_s23 + $0x138] sm:$0xff] }
  0x80   : > { %v430_v59 = vld [vmem:[%s1539_s30 + $0x138] sm:$0xff] }
  0x81   : > { %v787_v16 = vadd.f32 %v786_v11, %v659_v5  ;;  %v546_v5 = vsub.f32 %v290_v62, %v418_v63  ;;  %v673_v11 = vmul.f32 %v545_v0, %v545_v0  ;;  %v303_v63 = vld [vmem:[%s1533_s23 + $0x140] sm:$0xff] }
  0x82   : > { %v431_v0 = vld [vmem:[%s1539_s30 + $0x140] sm:$0xff] }
  0x83   : > { %v788_v21 = vadd.f32 %v787_v16, %v660_v10  ;;  %v547_v10 = vsub.f32 %v291_v3, %v419_v4  ;;  %v674_v16 = vmul.f32 %v546_v5, %v546_v5  ;;  %v304_v4 = vld [vmem:[%s1533_s23 + $0x148] sm:$0xff] }
  0x84   : > { %v432_v5 = vld [vmem:[%s1539_s30 + $0x148] sm:$0xff] }
  0x85   : > { %v789_v26 = vadd.f32 %v788_v21, %v661_v15  ;;  %v548_v15 = vsub.f32 %v292_v8, %v420_v9  ;;  %v675_v21 = vmul.f32 %v547_v10, %v547_v10  ;;  %v305_v9 = vld [vmem:[%s1533_s23 + $0x150] sm:$0xff] }
  0x86   : > { %v433_v10 = vld [vmem:[%s1539_s30 + $0x150] sm:$0xff] }
  0x87   : > { %v790_v31 = vadd.f32 %v789_v26, %v662_v20  ;;  %v549_v20 = vsub.f32 %v293_v13, %v421_v14  ;;  %v676_v26 = vmul.f32 %v548_v15, %v548_v15  ;;  %v306_v14 = vld [vmem:[%s1533_s23 + $0x158] sm:$0xff] }
  0x88   : > { %v434_v15 = vld [vmem:[%s1539_s30 + $0x158] sm:$0xff] }
  0x89   : > { %v791_v36 = vadd.f32 %v790_v31, %v663_v25  ;;  %v550_v25 = vsub.f32 %v294_v18, %v422_v19  ;;  %v677_v31 = vmul.f32 %v549_v20, %v549_v20  ;;  %v307_v19 = vld [vmem:[%s1533_s23 + $0x160] sm:$0xff] }
  0x8a   : > { %v435_v20 = vld [vmem:[%s1539_s30 + $0x160] sm:$0xff] }
  0x8b   : > { %v792_v41 = vadd.f32 %v791_v36, %v664_v30  ;;  %v551_v30 = vsub.f32 %v295_v23, %v423_v24  ;;  %v678_v36 = vmul.f32 %v550_v25, %v550_v25  ;;  %v308_v24 = vld [vmem:[%s1533_s23 + $0x168] sm:$0xff] }
  0x8c   : > { %v436_v25 = vld [vmem:[%s1539_s30 + $0x168] sm:$0xff] }
  0x8d   : > { %v793_v46 = vadd.f32 %v792_v41, %v665_v35  ;;  %v552_v35 = vsub.f32 %v296_v28, %v424_v29  ;;  %v679_v41 = vmul.f32 %v551_v30, %v551_v30  ;;  %v309_v29 = vld [vmem:[%s1533_s23 + $0x170] sm:$0xff] }
  0x8e   : > { %v437_v30 = vld [vmem:[%s1539_s30 + $0x170] sm:$0xff] }
  0x8f   : > { %v794_v51 = vadd.f32 %v793_v46, %v666_v40  ;;  %v553_v40 = vsub.f32 %v297_v33, %v425_v34  ;;  %v680_v46 = vmul.f32 %v552_v35, %v552_v35  ;;  %v310_v34 = vld [vmem:[%s1533_s23 + $0x178] sm:$0xff] }
  0x90   : > { %v438_v35 = vld [vmem:[%s1539_s30 + $0x178] sm:$0xff] }
  0x91   : > { %v795_v56 = vadd.f32 %v794_v51, %v667_v45  ;;  %v554_v45 = vsub.f32 %v298_v38, %v426_v39  ;;  %v681_v51 = vmul.f32 %v553_v40, %v553_v40  ;;  %v311_v39 = vld [vmem:[%s1533_s23 + $0x180] sm:$0xff] }
  0x92   : > { %v439_v40 = vld [vmem:[%s1539_s30 + $0x180] sm:$0xff] }
  0x93   : > { %v796_v61 = vadd.f32 %v795_v56, %v668_v50  ;;  %v555_v50 = vsub.f32 %v299_v43, %v427_v44  ;;  %v682_v56 = vmul.f32 %v554_v45, %v554_v45  ;;  %v312_v44 = vld [vmem:[%s1533_s23 + $0x188] sm:$0xff] }
  0x94   : > { %v440_v45 = vld [vmem:[%s1539_s30 + $0x188] sm:$0xff] }
  0x95   : > { %v797_v2 = vadd.f32 %v796_v61, %v669_v55  ;;  %v556_v55 = vsub.f32 %v300_v48, %v428_v49  ;;  %v683_v61 = vmul.f32 %v555_v50, %v555_v50  ;;  %v313_v49 = vld [vmem:[%s1533_s23 + $0x190] sm:$0xff] }
  0x96   : > { %v441_v50 = vld [vmem:[%s1539_s30 + $0x190] sm:$0xff] }
  0x97   : > { %v798_v7 = vadd.f32 %v797_v2, %v670_v60  ;;  %v557_v60 = vsub.f32 %v301_v53, %v429_v54  ;;  %v684_v2 = vmul.f32 %v556_v55, %v556_v55  ;;  %v314_v54 = vld [vmem:[%s1533_s23 + $0x198] sm:$0xff] }
  0x98   : > { %v442_v55 = vld [vmem:[%s1539_s30 + $0x198] sm:$0xff] }
  0x99   : > { %v799_v12 = vadd.f32 %v798_v7, %v671_v1  ;;  %v558_v1 = vsub.f32 %v302_v58, %v430_v59  ;;  %v685_v7 = vmul.f32 %v557_v60, %v557_v60  ;;  %v315_v59 = vld [vmem:[%s1533_s23 + $0x1a0] sm:$0xff] }
  0x9a   : > { %v443_v60 = vld [vmem:[%s1539_s30 + $0x1a0] sm:$0xff] }
  0x9b   : > { %v800_v17 = vadd.f32 %v799_v12, %v672_v6  ;;  %v559_v6 = vsub.f32 %v303_v63, %v431_v0  ;;  %v686_v12 = vmul.f32 %v558_v1, %v558_v1  ;;  %v316_v0 = vld [vmem:[%s1533_s23 + $0x1a8] sm:$0xff] }
  0x9c   : > { %v444_v1 = vld [vmem:[%s1539_s30 + $0x1a8] sm:$0xff] }
  0x9d   : > { %v801_v22 = vadd.f32 %v800_v17, %v673_v11  ;;  %v560_v11 = vsub.f32 %v304_v4, %v432_v5  ;;  %v687_v17 = vmul.f32 %v559_v6, %v559_v6  ;;  %v317_v5 = vld [vmem:[%s1533_s23 + $0x1b0] sm:$0xff] }
  0x9e   : > { %v445_v6 = vld [vmem:[%s1539_s30 + $0x1b0] sm:$0xff] }
  0x9f   : > { %v802_v27 = vadd.f32 %v801_v22, %v674_v16  ;;  %v561_v16 = vsub.f32 %v305_v9, %v433_v10  ;;  %v688_v22 = vmul.f32 %v560_v11, %v560_v11  ;;  %v318_v10 = vld [vmem:[%s1533_s23 + $0x1b8] sm:$0xff] }
  0xa0   : > { %v446_v11 = vld [vmem:[%s1539_s30 + $0x1b8] sm:$0xff] }
  0xa1   : > { %v803_v32 = vadd.f32 %v802_v27, %v675_v21  ;;  %v562_v21 = vsub.f32 %v306_v14, %v434_v15  ;;  %v689_v27 = vmul.f32 %v561_v16, %v561_v16  ;;  %v319_v15 = vld [vmem:[%s1533_s23 + $0x1c0] sm:$0xff] }
  0xa2   : > { %v447_v16 = vld [vmem:[%s1539_s30 + $0x1c0] sm:$0xff] }
  0xa3   : > { %v804_v37 = vadd.f32 %v803_v32, %v676_v26  ;;  %v563_v26 = vsub.f32 %v307_v19, %v435_v20  ;;  %v690_v32 = vmul.f32 %v562_v21, %v562_v21  ;;  %v320_v20 = vld [vmem:[%s1533_s23 + $0x1c8] sm:$0xff] }
  0xa4   : > { %v448_v21 = vld [vmem:[%s1539_s30 + $0x1c8] sm:$0xff] }
  0xa5   : > { %v805_v42 = vadd.f32 %v804_v37, %v677_v31  ;;  %v564_v31 = vsub.f32 %v308_v24, %v436_v25  ;;  %v691_v37 = vmul.f32 %v563_v26, %v563_v26  ;;  %v321_v25 = vld [vmem:[%s1533_s23 + $0x1d0] sm:$0xff] }
  0xa6   : > { %v449_v26 = vld [vmem:[%s1539_s30 + $0x1d0] sm:$0xff] }
  0xa7   : > { %v806_v47 = vadd.f32 %v805_v42, %v678_v36  ;;  %v565_v36 = vsub.f32 %v309_v29, %v437_v30  ;;  %v692_v42 = vmul.f32 %v564_v31, %v564_v31  ;;  %v322_v30 = vld [vmem:[%s1533_s23 + $0x1d8] sm:$0xff] }
  0xa8   : > { %v450_v31 = vld [vmem:[%s1539_s30 + $0x1d8] sm:$0xff] }
  0xa9   : > { %v807_v52 = vadd.f32 %v806_v47, %v679_v41  ;;  %v566_v41 = vsub.f32 %v310_v34, %v438_v35  ;;  %v693_v47 = vmul.f32 %v565_v36, %v565_v36  ;;  %v323_v35 = vld [vmem:[%s1533_s23 + $0x1e0] sm:$0xff] }
  0xaa   : > { %v451_v36 = vld [vmem:[%s1539_s30 + $0x1e0] sm:$0xff] }
  0xab   : > { %v808_v57 = vadd.f32 %v807_v52, %v680_v46  ;;  %v567_v46 = vsub.f32 %v311_v39, %v439_v40  ;;  %v694_v52 = vmul.f32 %v566_v41, %v566_v41  ;;  %v324_v40 = vld [vmem:[%s1533_s23 + $0x1e8] sm:$0xff] }
  0xac   : > { %v452_v41 = vld [vmem:[%s1539_s30 + $0x1e8] sm:$0xff] }
  0xad   : > { %v809_v62 = vadd.f32 %v808_v57, %v681_v51  ;;  %v568_v51 = vsub.f32 %v312_v44, %v440_v45  ;;  %v695_v57 = vmul.f32 %v567_v46, %v567_v46  ;;  %v325_v45 = vld [vmem:[%s1533_s23 + $0x1f0] sm:$0xff] }
  0xae   : > { %v453_v46 = vld [vmem:[%s1539_s30 + $0x1f0] sm:$0xff] }
  0xaf   : > { %v810_v3 = vadd.f32 %v809_v62, %v682_v56  ;;  %v569_v56 = vsub.f32 %v313_v49, %v441_v50  ;;  %v696_v62 = vmul.f32 %v568_v51, %v568_v51  ;;  %v326_v50 = vld [vmem:[%s1533_s23 + $0x1f8] sm:$0xff] }
  0xb0   : > { %v454_v51 = vld [vmem:[%s1539_s30 + $0x1f8] sm:$0xff] }
  0xb1   : > { %v811_v8 = vadd.f32 %v810_v3, %v683_v61  ;;  %v570_v61 = vsub.f32 %v314_v54, %v442_v55  ;;  %v697_v3 = vmul.f32 %v569_v56, %v569_v56  ;;  %v327_v55 = vld [vmem:[%s1533_s23 + $0x200] sm:$0xff] }
  0xb2   : > { %v455_v56 = vld [vmem:[%s1539_s30 + $0x200] sm:$0xff] }
  0xb3   : > { %v812_v13 = vadd.f32 %v811_v8, %v684_v2  ;;  %v571_v2 = vsub.f32 %v315_v59, %v443_v60  ;;  %v698_v8 = vmul.f32 %v570_v61, %v570_v61  ;;  %v328_v60 = vld [vmem:[%s1533_s23 + $0x208] sm:$0xff] }
  0xb4   : > { %v456_v61 = vld [vmem:[%s1539_s30 + $0x208] sm:$0xff] }
  0xb5   : > { %v813_v18 = vadd.f32 %v812_v13, %v685_v7  ;;  %v572_v7 = vsub.f32 %v316_v0, %v444_v1  ;;  %v699_v13 = vmul.f32 %v571_v2, %v571_v2  ;;  %v329_v1 = vld [vmem:[%s1533_s23 + $0x210] sm:$0xff] }
  0xb6   : > { %v457_v2 = vld [vmem:[%s1539_s30 + $0x210] sm:$0xff] }
  0xb7   : > { %v814_v23 = vadd.f32 %v813_v18, %v686_v12  ;;  %v573_v12 = vsub.f32 %v317_v5, %v445_v6  ;;  %v700_v18 = vmul.f32 %v572_v7, %v572_v7  ;;  %v330_v6 = vld [vmem:[%s1533_s23 + $0x218] sm:$0xff] }
  0xb8   : > { %v458_v7 = vld [vmem:[%s1539_s30 + $0x218] sm:$0xff] }
  0xb9   : > { %v815_v28 = vadd.f32 %v814_v23, %v687_v17  ;;  %v574_v17 = vsub.f32 %v318_v10, %v446_v11  ;;  %v701_v23 = vmul.f32 %v573_v12, %v573_v12  ;;  %v331_v11 = vld [vmem:[%s1533_s23 + $0x220] sm:$0xff] }
  0xba   : > { %v459_v12 = vld [vmem:[%s1539_s30 + $0x220] sm:$0xff] }
  0xbb   : > { %v816_v33 = vadd.f32 %v815_v28, %v688_v22  ;;  %v575_v22 = vsub.f32 %v319_v15, %v447_v16  ;;  %v702_v28 = vmul.f32 %v574_v17, %v574_v17  ;;  %v332_v16 = vld [vmem:[%s1533_s23 + $0x228] sm:$0xff] }
  0xbc   : > { %v460_v17 = vld [vmem:[%s1539_s30 + $0x228] sm:$0xff] }
  0xbd   : > { %v817_v38 = vadd.f32 %v816_v33, %v689_v27  ;;  %v576_v27 = vsub.f32 %v320_v20, %v448_v21  ;;  %v703_v33 = vmul.f32 %v575_v22, %v575_v22  ;;  %v333_v21 = vld [vmem:[%s1533_s23 + $0x230] sm:$0xff] }
  0xbe   : > { %v461_v22 = vld [vmem:[%s1539_s30 + $0x230] sm:$0xff] }
  0xbf   : > { %v818_v43 = vadd.f32 %v817_v38, %v690_v32  ;;  %v577_v32 = vsub.f32 %v321_v25, %v449_v26  ;;  %v704_v38 = vmul.f32 %v576_v27, %v576_v27  ;;  %v334_v26 = vld [vmem:[%s1533_s23 + $0x238] sm:$0xff] }
  0xc0   : > { %v462_v27 = vld [vmem:[%s1539_s30 + $0x238] sm:$0xff] }
  0xc1   : > { %v819_v48 = vadd.f32 %v818_v43, %v691_v37  ;;  %v578_v37 = vsub.f32 %v322_v30, %v450_v31  ;;  %v705_v43 = vmul.f32 %v577_v32, %v577_v32  ;;  %v335_v31 = vld [vmem:[%s1533_s23 + $0x240] sm:$0xff] }
  0xc2   : > { %v463_v32 = vld [vmem:[%s1539_s30 + $0x240] sm:$0xff] }
  0xc3   : > { %v820_v53 = vadd.f32 %v819_v48, %v692_v42  ;;  %v579_v42 = vsub.f32 %v323_v35, %v451_v36  ;;  %v706_v48 = vmul.f32 %v578_v37, %v578_v37  ;;  %v336_v36 = vld [vmem:[%s1533_s23 + $0x248] sm:$0xff] }
  0xc4   : > { %v464_v37 = vld [vmem:[%s1539_s30 + $0x248] sm:$0xff] }
  0xc5   : > { %v821_v58 = vadd.f32 %v820_v53, %v693_v47  ;;  %v580_v47 = vsub.f32 %v324_v40, %v452_v41  ;;  %v707_v53 = vmul.f32 %v579_v42, %v579_v42  ;;  %v337_v41 = vld [vmem:[%s1533_s23 + $0x250] sm:$0xff] }
  0xc6   : > { %v465_v42 = vld [vmem:[%s1539_s30 + $0x250] sm:$0xff] }
  0xc7   : > { %v822_v63 = vadd.f32 %v821_v58, %v694_v52  ;;  %v581_v52 = vsub.f32 %v325_v45, %v453_v46  ;;  %v708_v58 = vmul.f32 %v580_v47, %v580_v47  ;;  %v338_v46 = vld [vmem:[%s1533_s23 + $0x258] sm:$0xff] }
  0xc8   : > { %v466_v47 = vld [vmem:[%s1539_s30 + $0x258] sm:$0xff] }
  0xc9   : > { %v823_v4 = vadd.f32 %v822_v63, %v695_v57  ;;  %v582_v57 = vsub.f32 %v326_v50, %v454_v51  ;;  %v709_v63 = vmul.f32 %v581_v52, %v581_v52  ;;  %v339_v51 = vld [vmem:[%s1533_s23 + $0x260] sm:$0xff] }
  0xca   : > { %v467_v52 = vld [vmem:[%s1539_s30 + $0x260] sm:$0xff] }
  0xcb   : > { %v824_v9 = vadd.f32 %v823_v4, %v696_v62  ;;  %v583_v62 = vsub.f32 %v327_v55, %v455_v56  ;;  %v710_v4 = vmul.f32 %v582_v57, %v582_v57  ;;  %v340_v56 = vld [vmem:[%s1533_s23 + $0x268] sm:$0xff] }
  0xcc   : > { %v468_v57 = vld [vmem:[%s1539_s30 + $0x268] sm:$0xff] }
  0xcd   : > { %v825_v14 = vadd.f32 %v824_v9, %v697_v3  ;;  %v584_v3 = vsub.f32 %v328_v60, %v456_v61  ;;  %v711_v9 = vmul.f32 %v583_v62, %v583_v62  ;;  %v341_v61 = vld [vmem:[%s1533_s23 + $0x270] sm:$0xff] }
  0xce   : > { %v469_v62 = vld [vmem:[%s1539_s30 + $0x270] sm:$0xff] }
  0xcf   : > { %v826_v19 = vadd.f32 %v825_v14, %v698_v8  ;;  %v585_v8 = vsub.f32 %v329_v1, %v457_v2  ;;  %v712_v14 = vmul.f32 %v584_v3, %v584_v3  ;;  %v342_v2 = vld [vmem:[%s1533_s23 + $0x278] sm:$0xff] }
  0xd0   : > { %v470_v3 = vld [vmem:[%s1539_s30 + $0x278] sm:$0xff] }
  0xd1   : > { %v827_v24 = vadd.f32 %v826_v19, %v699_v13  ;;  %v586_v13 = vsub.f32 %v330_v6, %v458_v7  ;;  %v713_v19 = vmul.f32 %v585_v8, %v585_v8  ;;  %v343_v7 = vld [vmem:[%s1533_s23 + $0x280] sm:$0xff] }
  0xd2   : > { %v471_v8 = vld [vmem:[%s1539_s30 + $0x280] sm:$0xff] }
  0xd3   : > { %v828_v29 = vadd.f32 %v827_v24, %v700_v18  ;;  %v587_v18 = vsub.f32 %v331_v11, %v459_v12  ;;  %v714_v24 = vmul.f32 %v586_v13, %v586_v13  ;;  %v344_v12 = vld [vmem:[%s1533_s23 + $0x288] sm:$0xff] }
  0xd4   : > { %v472_v13 = vld [vmem:[%s1539_s30 + $0x288] sm:$0xff] }
  0xd5   : > { %v829_v34 = vadd.f32 %v828_v29, %v701_v23  ;;  %v588_v23 = vsub.f32 %v332_v16, %v460_v17  ;;  %v715_v29 = vmul.f32 %v587_v18, %v587_v18  ;;  %v345_v17 = vld [vmem:[%s1533_s23 + $0x290] sm:$0xff] }
  0xd6   : > { %v473_v18 = vld [vmem:[%s1539_s30 + $0x290] sm:$0xff] }
  0xd7   : > { %v830_v39 = vadd.f32 %v829_v34, %v702_v28  ;;  %v589_v28 = vsub.f32 %v333_v21, %v461_v22  ;;  %v716_v34 = vmul.f32 %v588_v23, %v588_v23  ;;  %v346_v22 = vld [vmem:[%s1533_s23 + $0x298] sm:$0xff] }
  0xd8   : > { %v474_v23 = vld [vmem:[%s1539_s30 + $0x298] sm:$0xff] }
  0xd9   : > { %v831_v44 = vadd.f32 %v830_v39, %v703_v33  ;;  %v590_v33 = vsub.f32 %v334_v26, %v462_v27  ;;  %v717_v39 = vmul.f32 %v589_v28, %v589_v28  ;;  %v347_v27 = vld [vmem:[%s1533_s23 + $0x2a0] sm:$0xff] }
  0xda   : > { %v475_v28 = vld [vmem:[%s1539_s30 + $0x2a0] sm:$0xff] }
  0xdb   : > { %v832_v49 = vadd.f32 %v831_v44, %v704_v38  ;;  %v591_v38 = vsub.f32 %v335_v31, %v463_v32  ;;  %v718_v44 = vmul.f32 %v590_v33, %v590_v33  ;;  %v348_v32 = vld [vmem:[%s1533_s23 + $0x2a8] sm:$0xff] }
  0xdc   : > { %v476_v33 = vld [vmem:[%s1539_s30 + $0x2a8] sm:$0xff] }
  0xdd   : > { %v833_v54 = vadd.f32 %v832_v49, %v705_v43  ;;  %v592_v43 = vsub.f32 %v336_v36, %v464_v37  ;;  %v719_v49 = vmul.f32 %v591_v38, %v591_v38  ;;  %v349_v37 = vld [vmem:[%s1533_s23 + $0x2b0] sm:$0xff] }
  0xde   : > { %v477_v38 = vld [vmem:[%s1539_s30 + $0x2b0] sm:$0xff] }
  0xdf   : > { %v834_v59 = vadd.f32 %v833_v54, %v706_v48  ;;  %v593_v48 = vsub.f32 %v337_v41, %v465_v42  ;;  %v720_v54 = vmul.f32 %v592_v43, %v592_v43  ;;  %v350_v42 = vld [vmem:[%s1533_s23 + $0x2b8] sm:$0xff] }
  0xe0   : > { %v478_v43 = vld [vmem:[%s1539_s30 + $0x2b8] sm:$0xff] }
  0xe1   : > { %v835_v0 = vadd.f32 %v834_v59, %v707_v53  ;;  %v594_v53 = vsub.f32 %v338_v46, %v466_v47  ;;  %v721_v59 = vmul.f32 %v593_v48, %v593_v48  ;;  %v351_v47 = vld [vmem:[%s1533_s23 + $0x2c0] sm:$0xff] }
  0xe2   : > { %v479_v48 = vld [vmem:[%s1539_s30 + $0x2c0] sm:$0xff] }
  0xe3   : > { %v836_v5 = vadd.f32 %v835_v0, %v708_v58  ;;  %v595_v58 = vsub.f32 %v339_v51, %v467_v52  ;;  %v722_v0 = vmul.f32 %v594_v53, %v594_v53  ;;  %v352_v52 = vld [vmem:[%s1533_s23 + $0x2c8] sm:$0xff] }
  0xe4   : > { %v480_v53 = vld [vmem:[%s1539_s30 + $0x2c8] sm:$0xff] }
  0xe5   : > { %v837_v10 = vadd.f32 %v836_v5, %v709_v63  ;;  %v596_v63 = vsub.f32 %v340_v56, %v468_v57  ;;  %v723_v5 = vmul.f32 %v595_v58, %v595_v58  ;;  %v353_v57 = vld [vmem:[%s1533_s23 + $0x2d0] sm:$0xff] }
  0xe6   : > { %v481_v58 = vld [vmem:[%s1539_s30 + $0x2d0] sm:$0xff] }
  0xe7   : > { %v838_v15 = vadd.f32 %v837_v10, %v710_v4  ;;  %v597_v4 = vsub.f32 %v341_v61, %v469_v62  ;;  %v724_v10 = vmul.f32 %v596_v63, %v596_v63  ;;  %v354_v62 = vld [vmem:[%s1533_s23 + $0x2d8] sm:$0xff] }
  0xe8   : > { %v482_v63 = vld [vmem:[%s1539_s30 + $0x2d8] sm:$0xff] }
  0xe9   : > { %v839_v20 = vadd.f32 %v838_v15, %v711_v9  ;;  %v598_v9 = vsub.f32 %v342_v2, %v470_v3  ;;  %v725_v15 = vmul.f32 %v597_v4, %v597_v4  ;;  %v355_v3 = vld [vmem:[%s1533_s23 + $0x2e0] sm:$0xff] }
  0xea   : > { %v483_v4 = vld [vmem:[%s1539_s30 + $0x2e0] sm:$0xff] }
  0xeb   : > { %v840_v25 = vadd.f32 %v839_v20, %v712_v14  ;;  %v599_v14 = vsub.f32 %v343_v7, %v471_v8  ;;  %v726_v20 = vmul.f32 %v598_v9, %v598_v9  ;;  %v356_v8 = vld [vmem:[%s1533_s23 + $0x2e8] sm:$0xff] }
  0xec   : > { %v484_v9 = vld [vmem:[%s1539_s30 + $0x2e8] sm:$0xff] }
  0xed   : > { %v841_v30 = vadd.f32 %v840_v25, %v713_v19  ;;  %v600_v19 = vsub.f32 %v344_v12, %v472_v13  ;;  %v727_v25 = vmul.f32 %v599_v14, %v599_v14  ;;  %v357_v13 = vld [vmem:[%s1533_s23 + $0x2f0] sm:$0xff] }
  0xee   : > { %v485_v14 = vld [vmem:[%s1539_s30 + $0x2f0] sm:$0xff] }
  0xef   : > { %v842_v35 = vadd.f32 %v841_v30, %v714_v24  ;;  %v601_v24 = vsub.f32 %v345_v17, %v473_v18  ;;  %v728_v30 = vmul.f32 %v600_v19, %v600_v19  ;;  %v358_v18 = vld [vmem:[%s1533_s23 + $0x2f8] sm:$0xff] }
  0xf0   : > { %v486_v19 = vld [vmem:[%s1539_s30 + $0x2f8] sm:$0xff] }
  0xf1   : > { %v843_v40 = vadd.f32 %v842_v35, %v715_v29  ;;  %v602_v29 = vsub.f32 %v346_v22, %v474_v23  ;;  %v729_v35 = vmul.f32 %v601_v24, %v601_v24  ;;  %v359_v23 = vld [vmem:[%s1533_s23 + $0x300] sm:$0xff] }
  0xf2   : > { %v487_v24 = vld [vmem:[%s1539_s30 + $0x300] sm:$0xff] }
  0xf3   : > { %v844_v45 = vadd.f32 %v843_v40, %v716_v34  ;;  %v603_v34 = vsub.f32 %v347_v27, %v475_v28  ;;  %v730_v40 = vmul.f32 %v602_v29, %v602_v29  ;;  %v360_v28 = vld [vmem:[%s1533_s23 + $0x308] sm:$0xff] }
  0xf4   : > { %v488_v29 = vld [vmem:[%s1539_s30 + $0x308] sm:$0xff] }
  0xf5   : > { %v845_v50 = vadd.f32 %v844_v45, %v717_v39  ;;  %v604_v39 = vsub.f32 %v348_v32, %v476_v33  ;;  %v731_v45 = vmul.f32 %v603_v34, %v603_v34  ;;  %v361_v33 = vld [vmem:[%s1533_s23 + $0x310] sm:$0xff] }
  0xf6   : > { %v489_v34 = vld [vmem:[%s1539_s30 + $0x310] sm:$0xff] }
  0xf7   : > { %v846_v55 = vadd.f32 %v845_v50, %v718_v44  ;;  %v605_v44 = vsub.f32 %v349_v37, %v477_v38  ;;  %v732_v50 = vmul.f32 %v604_v39, %v604_v39  ;;  %v362_v38 = vld [vmem:[%s1533_s23 + $0x318] sm:$0xff] }
  0xf8   : > { %v490_v39 = vld [vmem:[%s1539_s30 + $0x318] sm:$0xff] }
  0xf9   : > { %v847_v60 = vadd.f32 %v846_v55, %v719_v49  ;;  %v606_v49 = vsub.f32 %v350_v42, %v478_v43  ;;  %v733_v55 = vmul.f32 %v605_v44, %v605_v44  ;;  %v363_v43 = vld [vmem:[%s1533_s23 + $0x320] sm:$0xff] }
  0xfa   : > { %v491_v44 = vld [vmem:[%s1539_s30 + $0x320] sm:$0xff] }
  0xfb   : > { %v848_v1 = vadd.f32 %v847_v60, %v720_v54  ;;  %v607_v54 = vsub.f32 %v351_v47, %v479_v48  ;;  %v734_v60 = vmul.f32 %v606_v49, %v606_v49  ;;  %v364_v48 = vld [vmem:[%s1533_s23 + $0x328] sm:$0xff] }
  0xfc   : > { %v492_v49 = vld [vmem:[%s1539_s30 + $0x328] sm:$0xff] }
  0xfd   : > { %v849_v6 = vadd.f32 %v848_v1, %v721_v59  ;;  %v608_v59 = vsub.f32 %v352_v52, %v480_v53  ;;  %v735_v1 = vmul.f32 %v607_v54, %v607_v54  ;;  %v365_v53 = vld [vmem:[%s1533_s23 + $0x330] sm:$0xff] }
  0xfe   : > { %v493_v54 = vld [vmem:[%s1539_s30 + $0x330] sm:$0xff] }
  0xff   : > { %v850_v11 = vadd.f32 %v849_v6, %v722_v0  ;;  %v609_v0 = vsub.f32 %v353_v57, %v481_v58  ;;  %v736_v6 = vmul.f32 %v608_v59, %v608_v59  ;;  %v366_v58 = vld [vmem:[%s1533_s23 + $0x338] sm:$0xff] }
 0x100   : > { %v494_v59 = vld [vmem:[%s1539_s30 + $0x338] sm:$0xff] }
 0x101   : > { %v851_v16 = vadd.f32 %v850_v11, %v723_v5  ;;  %v610_v5 = vsub.f32 %v354_v62, %v482_v63  ;;  %v737_v11 = vmul.f32 %v609_v0, %v609_v0  ;;  %v367_v63 = vld [vmem:[%s1533_s23 + $0x340] sm:$0xff] }
 0x102   : > { %v495_v0 = vld [vmem:[%s1539_s30 + $0x340] sm:$0xff] }
 0x103   : > { %v852_v21 = vadd.f32 %v851_v16, %v724_v10  ;;  %v611_v10 = vsub.f32 %v355_v3, %v483_v4  ;;  %v738_v16 = vmul.f32 %v610_v5, %v610_v5  ;;  %v368_v4 = vld [vmem:[%s1533_s23 + $0x348] sm:$0xff] }
 0x104   : > { %v496_v5 = vld [vmem:[%s1539_s30 + $0x348] sm:$0xff] }
 0x105   : > { %v853_v26 = vadd.f32 %v852_v21, %v725_v15  ;;  %v612_v15 = vsub.f32 %v356_v8, %v484_v9  ;;  %v739_v21 = vmul.f32 %v611_v10, %v611_v10  ;;  %v369_v9 = vld [vmem:[%s1533_s23 + $0x350] sm:$0xff] }
 0x106   : > { %v497_v10 = vld [vmem:[%s1539_s30 + $0x350] sm:$0xff] }
 0x107   : > { %v854_v31 = vadd.f32 %v853_v26, %v726_v20  ;;  %v613_v20 = vsub.f32 %v357_v13, %v485_v14  ;;  %v740_v26 = vmul.f32 %v612_v15, %v612_v15  ;;  %v370_v14 = vld [vmem:[%s1533_s23 + $0x358] sm:$0xff] }
 0x108   : > { %v498_v15 = vld [vmem:[%s1539_s30 + $0x358] sm:$0xff] }
 0x109   : > { %v855_v36 = vadd.f32 %v854_v31, %v727_v25  ;;  %v614_v25 = vsub.f32 %v358_v18, %v486_v19  ;;  %v741_v31 = vmul.f32 %v613_v20, %v613_v20  ;;  %v371_v19 = vld [vmem:[%s1533_s23 + $0x360] sm:$0xff] }
 0x10a   : > { %v499_v20 = vld [vmem:[%s1539_s30 + $0x360] sm:$0xff] }
 0x10b   : > { %v856_v41 = vadd.f32 %v855_v36, %v728_v30  ;;  %v615_v30 = vsub.f32 %v359_v23, %v487_v24  ;;  %v742_v36 = vmul.f32 %v614_v25, %v614_v25  ;;  %v372_v24 = vld [vmem:[%s1533_s23 + $0x368] sm:$0xff] }
 0x10c   : > { %v500_v25 = vld [vmem:[%s1539_s30 + $0x368] sm:$0xff] }
 0x10d   : > { %v857_v46 = vadd.f32 %v856_v41, %v729_v35  ;;  %v616_v35 = vsub.f32 %v360_v28, %v488_v29  ;;  %v743_v41 = vmul.f32 %v615_v30, %v615_v30  ;;  %v373_v29 = vld [vmem:[%s1533_s23 + $0x370] sm:$0xff] }
 0x10e   : > { %v501_v30 = vld [vmem:[%s1539_s30 + $0x370] sm:$0xff] }
 0x10f   : > { %v858_v51 = vadd.f32 %v857_v46, %v730_v40  ;;  %v617_v40 = vsub.f32 %v361_v33, %v489_v34  ;;  %v744_v46 = vmul.f32 %v616_v35, %v616_v35  ;;  %v374_v34 = vld [vmem:[%s1533_s23 + $0x378] sm:$0xff] }
 0x110   : > { %v502_v35 = vld [vmem:[%s1539_s30 + $0x378] sm:$0xff] }
 0x111   : > { %v859_v56 = vadd.f32 %v858_v51, %v731_v45  ;;  %v618_v45 = vsub.f32 %v362_v38, %v490_v39  ;;  %v745_v51 = vmul.f32 %v617_v40, %v617_v40  ;;  %v375_v39 = vld [vmem:[%s1533_s23 + $0x380] sm:$0xff] }
 0x112   : > { %v503_v40 = vld [vmem:[%s1539_s30 + $0x380] sm:$0xff] }
 0x113   : > { %v860_v61 = vadd.f32 %v859_v56, %v732_v50  ;;  %v619_v50 = vsub.f32 %v363_v43, %v491_v44  ;;  %v746_v56 = vmul.f32 %v618_v45, %v618_v45  ;;  %v376_v44 = vld [vmem:[%s1533_s23 + $0x388] sm:$0xff] }
 0x114   : > { %v504_v45 = vld [vmem:[%s1539_s30 + $0x388] sm:$0xff] }
 0x115   : > { %v861_v2 = vadd.f32 %v860_v61, %v733_v55  ;;  %v620_v55 = vsub.f32 %v364_v48, %v492_v49  ;;  %v747_v61 = vmul.f32 %v619_v50, %v619_v50  ;;  %v377_v49 = vld [vmem:[%s1533_s23 + $0x390] sm:$0xff] }
 0x116   : > { %v505_v50 = vld [vmem:[%s1539_s30 + $0x390] sm:$0xff] }
 0x117   : > { %v862_v7 = vadd.f32 %v861_v2, %v734_v60  ;;  %v621_v60 = vsub.f32 %v365_v53, %v493_v54  ;;  %v748_v2 = vmul.f32 %v620_v55, %v620_v55  ;;  %v378_v54 = vld [vmem:[%s1533_s23 + $0x398] sm:$0xff] }
 0x118   : > { %v506_v55 = vld [vmem:[%s1539_s30 + $0x398] sm:$0xff] }
 0x119   : > { %v863_v12 = vadd.f32 %v862_v7, %v735_v1  ;;  %v622_v1 = vsub.f32 %v366_v58, %v494_v59  ;;  %v749_v7 = vmul.f32 %v621_v60, %v621_v60  ;;  %v379_v59 = vld [vmem:[%s1533_s23 + $0x3a0] sm:$0xff] }
 0x11a   : > { %v507_v60 = vld [vmem:[%s1539_s30 + $0x3a0] sm:$0xff] }
 0x11b   : > { %v864_v17 = vadd.f32 %v863_v12, %v736_v6  ;;  %v623_v6 = vsub.f32 %v367_v63, %v495_v0  ;;  %v750_v12 = vmul.f32 %v622_v1, %v622_v1  ;;  %v380_v0 = vld [vmem:[%s1533_s23 + $0x3a8] sm:$0xff] }
 0x11c   : > { %v508_v1 = vld [vmem:[%s1539_s30 + $0x3a8] sm:$0xff] }
 0x11d   : > { %v865_v22 = vadd.f32 %v864_v17, %v737_v11  ;;  %v624_v11 = vsub.f32 %v368_v4, %v496_v5  ;;  %v751_v17 = vmul.f32 %v623_v6, %v623_v6  ;;  %v381_v5 = vld [vmem:[%s1533_s23 + $0x3b0] sm:$0xff] }
 0x11e   : > { %v509_v6 = vld [vmem:[%s1539_s30 + $0x3b0] sm:$0xff] }
 0x11f   : > { %v866_v27 = vadd.f32 %v865_v22, %v738_v16  ;;  %v625_v16 = vsub.f32 %v369_v9, %v497_v10  ;;  %v752_v22 = vmul.f32 %v624_v11, %v624_v11  ;;  %v382_v10 = vld [vmem:[%s1533_s23 + $0x3b8] sm:$0xff] }
 0x120   : > { %v510_v11 = vld [vmem:[%s1539_s30 + $0x3b8] sm:$0xff] }
 0x121   : > { %v867_v32 = vadd.f32 %v866_v27, %v739_v21  ;;  %v626_v21 = vsub.f32 %v370_v14, %v498_v15  ;;  %v753_v27 = vmul.f32 %v625_v16, %v625_v16  ;;  %v383_v15 = vld [vmem:[%s1533_s23 + $0x3c0] sm:$0xff] }
 0x122   : > { %v511_v16 = vld [vmem:[%s1539_s30 + $0x3c0] sm:$0xff] }
 0x123   : > { %v868_v37 = vadd.f32 %v867_v32, %v740_v26  ;;  %v627_v26 = vsub.f32 %v371_v19, %v499_v20  ;;  %v754_v32 = vmul.f32 %v626_v21, %v626_v21  ;;  %v384_v20 = vld [vmem:[%s1533_s23 + $0x3c8] sm:$0xff] }
 0x124   : > { %v512_v21 = vld [vmem:[%s1539_s30 + $0x3c8] sm:$0xff] }
 0x125   : > { %v869_v42 = vadd.f32 %v868_v37, %v741_v31  ;;  %v628_v31 = vsub.f32 %v372_v24, %v500_v25  ;;  %v755_v37 = vmul.f32 %v627_v26, %v627_v26  ;;  %v385_v25 = vld [vmem:[%s1533_s23 + $0x3d0] sm:$0xff] }
 0x126   : > { %v513_v26 = vld [vmem:[%s1539_s30 + $0x3d0] sm:$0xff] }
 0x127   : > { %v870_v47 = vadd.f32 %v869_v42, %v742_v36  ;;  %v629_v36 = vsub.f32 %v373_v29, %v501_v30  ;;  %v756_v42 = vmul.f32 %v628_v31, %v628_v31  ;;  %v386_v30 = vld [vmem:[%s1533_s23 + $0x3d8] sm:$0xff] }
 0x128   : > { %v514_v31 = vld [vmem:[%s1539_s30 + $0x3d8] sm:$0xff] }
 0x129   : > { %v871_v52 = vadd.f32 %v870_v47, %v743_v41  ;;  %v630_v41 = vsub.f32 %v374_v34, %v502_v35  ;;  %v757_v47 = vmul.f32 %v629_v36, %v629_v36  ;;  %v387_v35 = vld [vmem:[%s1533_s23 + $0x3e0] sm:$0xff] }
 0x12a   : > { %v515_v36 = vld [vmem:[%s1539_s30 + $0x3e0] sm:$0xff] }
 0x12b   : > { %v872_v57 = vadd.f32 %v871_v52, %v744_v46  ;;  %v631_v46 = vsub.f32 %v375_v39, %v503_v40  ;;  %v758_v52 = vmul.f32 %v630_v41, %v630_v41  ;;  %v388_v40 = vld [vmem:[%s1533_s23 + $0x3e8] sm:$0xff] }
 0x12c   : > { %v516_v41 = vld [vmem:[%s1539_s30 + $0x3e8] sm:$0xff] }
 0x12d   : > { %v873_v62 = vadd.f32 %v872_v57, %v745_v51  ;;  %v632_v51 = vsub.f32 %v376_v44, %v504_v45  ;;  %v759_v57 = vmul.f32 %v631_v46, %v631_v46  ;;  %v389_v45 = vld [vmem:[%s1533_s23 + $0x3f0] sm:$0xff] }
 0x12e   : > { %v517_v46 = vld [vmem:[%s1539_s30 + $0x3f0] sm:$0xff] }
 0x12f   : > { %v874_v3 = vadd.f32 %v873_v62, %v746_v56  ;;  %v633_v56 = vsub.f32 %v377_v49, %v505_v50  ;;  %v760_v62 = vmul.f32 %v632_v51, %v632_v51  ;;  %v390_v50 = vld [vmem:[%s1533_s23 + $0x3f8] sm:$0xff] }
 0x130   : > { %v518_v51 = vld [vmem:[%s1539_s30 + $0x3f8] sm:$0xff] }
 0x131   : > { %v875_v8 = vadd.f32 %v874_v3, %v747_v61  ;;  %v634_v61 = vsub.f32 %v378_v54, %v506_v55  ;;  %v761_v3 = vmul.f32 %v633_v56, %v633_v56  ;;  %v646_v55 = vsub.f32 %v390_v50, %v518_v51 }
 0x133   : > { %v876_v13 = vadd.f32 %v875_v8, %v748_v2  ;;  %v635_v2 = vsub.f32 %v379_v59, %v507_v60  ;;  %v762_v8 = vmul.f32 %v634_v61, %v634_v61  ;;  %v774_v60 = vmul.f32 %v646_v55, %v646_v55 }
 0x135   : > { %v877_v18 = vadd.f32 %v876_v13, %v749_v7  ;;  %v636_v7 = vsub.f32 %v380_v0, %v508_v1  ;;  %v763_v13 = vmul.f32 %v635_v2, %v635_v2 }
 0x137   : > { %v878_v23 = vadd.f32 %v877_v18, %v750_v12  ;;  %v637_v12 = vsub.f32 %v381_v5, %v509_v6  ;;  %v764_v18 = vmul.f32 %v636_v7, %v636_v7 }
 0x139   : > { %v879_v28 = vadd.f32 %v878_v23, %v751_v17  ;;  %v638_v17 = vsub.f32 %v382_v10, %v510_v11  ;;  %v765_v23 = vmul.f32 %v637_v12, %v637_v12 }
 0x13b   : > { %v880_v33 = vadd.f32 %v879_v28, %v752_v22  ;;  %v639_v22 = vsub.f32 %v383_v15, %v511_v16  ;;  %v766_v28 = vmul.f32 %v638_v17, %v638_v17 }
 0x13d   : > { %v881_v38 = vadd.f32 %v880_v33, %v753_v27  ;;  %v640_v27 = vsub.f32 %v384_v20, %v512_v21  ;;  %v767_v33 = vmul.f32 %v639_v22, %v639_v22 }
 0x13f   : > { %v882_v43 = vadd.f32 %v881_v38, %v754_v32  ;;  %v641_v32 = vsub.f32 %v385_v25, %v513_v26  ;;  %v768_v38 = vmul.f32 %v640_v27, %v640_v27 }
 0x141   : > { %v883_v48 = vadd.f32 %v882_v43, %v755_v37  ;;  %v642_v37 = vsub.f32 %v386_v30, %v514_v31  ;;  %v769_v43 = vmul.f32 %v641_v32, %v641_v32 }
 0x143   : > { %v884_v53 = vadd.f32 %v883_v48, %v756_v42  ;;  %v643_v42 = vsub.f32 %v387_v35, %v515_v36  ;;  %v770_v48 = vmul.f32 %v642_v37, %v642_v37 }
 0x145   : > { %v885_v58 = vadd.f32 %v884_v53, %v757_v47  ;;  %v644_v47 = vsub.f32 %v388_v40, %v516_v41  ;;  %v771_v53 = vmul.f32 %v643_v42, %v643_v42 }
 0x147   : > { %v886_v63 = vadd.f32 %v885_v58, %v758_v52  ;;  %v645_v52 = vsub.f32 %v389_v45, %v517_v46  ;;  %v772_v56 = vmul.f32 %v644_v47, %v644_v47 }
 0x149   : > { %v887_v4 = vadd.f32 %v886_v63, %v759_v57  ;;  %v773_v58 = vmul.f32 %v645_v52, %v645_v52  ;;  %v775_v63 = vld [vmem:[%s1548_s26] sm:$0xff] }
 0x14b   : > { %v888_v9 = vadd.f32 %v887_v4, %v760_v62 }
 0x14d   : > { %v889_v14 = vadd.f32 %v888_v9, %v761_v3 }
 0x14f   : > { %v890_v19 = vadd.f32 %v889_v14, %v762_v8 }
 0x151   : > { %v891_v24 = vadd.f32 %v890_v19, %v763_v13 }
 0x153   : > { %v892_v29 = vadd.f32 %v891_v24, %v764_v18 }
 0x155   : > { %v893_v34 = vadd.f32 %v892_v29, %v765_v23 }
 0x157   : > { %v894_v39 = vadd.f32 %v893_v34, %v766_v28 }
 0x159   : > { %v895_v44 = vadd.f32 %v894_v39, %v767_v33 }
 0x15b   : > { %v896_v49 = vadd.f32 %v895_v44, %v768_v38 }
 0x15d   : > { %v897_v54 = vadd.f32 %v896_v49, %v769_v43 }
 0x15f   : > { %v898_v57 = vadd.f32 %v897_v54, %v770_v48 }
 0x161   : > { %v899_v59 = vadd.f32 %v898_v57, %v771_v53 }
 0x163   : > { %v900_v61 = vadd.f32 %v899_v59, %v772_v56 }
 0x165   : > { %v901_v62 = vadd.f32 %v900_v61, %v773_v58 }
 0x167   : > { %v902_v0 = vadd.f32 %v901_v62, %v774_v60 }
 0x169   : > { %v903_v1 = vadd.f32 %v902_v0, %v775_v63 }
 0x16b   : > { %904 = vst [vmem:[%s1548_s26] sm:$0xff] %v903_v1 }
 0x16c   : > { %1271 = shalt.err (!%p1268_p2)
}
 0x16d   : > { %1066 = dma.vmem_to_hbm [thread:$0]  (%p1491_p12), %s919_s25, 128, %s921_s21, %s906_s16  }
 0x16e PF: > { %p1072_p3 = scmp.ge.s32.totalorder %s1374_s19, 2  ;;  %s932_s23 = sand.u32 1, %s1334_s9  }
 0x16f   : > { %s933_s22 = scalar_lea.sflag [#allocation4], %s932_s23 }
 0x170   : > { %p1069_p4 = pnand %p1072_p3, %p1499_p1 }
 0x172   : > { %p1070_p6 = pneg %p1069_p4 }
 0x174   : > { %1325 = dma.done.wait (%p1070_p6), %s933_s22, 128  }
 0x175   : > { %1327 = vsyncadd (%p1070_p6), %s933_s22, 4294967168  ;;  %s21_s19 = sadd.s32 1, %s1374_s19   ;;  %s1881_s30 = sld [smem:[#allocation15_spill]] }
 0x176   : > { %p18_p8 = scmp.ge.s32.totalorder %s21_s19, 6   ;;  %s1882_s8 = sld [smem:[#allocation16_spill]] }
 0x177   : > { %s1883_s15 = sld [smem:[#allocation11_spill]]  ;;  %s1887_s9 = smov %s1338_s10 }
 0x178   : > { %s1884_s16 = sld [smem:[#allocation12_spill]]  ;;  %s1888_s10 = smov %s1342_s11 }
 0x179   : > { %s1885_s17 = sld [smem:[#allocation13_spill]]  ;;  %s1890_s12 = smov %s1350_s13 }
 0x17a   : > { %s1886_s18 = sld [smem:[#allocation14_spill]]  ;;  %s1891_s13 = smov %s1354_s14 }
 0x17b   : > { %s1889_s11 = smov %s1881_s30  ;;  %20 = sbr.rel (!%p18_p8) target bundleno = 11 (0xb), region = 90 }
 0x17c   : > { %s1892_s14 = smov %s1882_s8 }
 0x180   :  { %939 = vsyncpa [#allocation3], 1 }
 0x181   :  { %941 = vsyncpa [#allocation3 + $0x1], 1 }
 0x182   :  { %942 = vsyncpa [#allocation6], 1 }
 0x183   :  { %944 = vsyncpa [#allocation6 + $0x1], 1 }
 0x184   :  { %945 = vsyncpa [#allocation4], 1 }
 0x185   :  { %947 = vsyncpa [#allocation4 + $0x1], 1 }

</bundles_post_ra>
